<compile_context>
chip_gen: v5e
topology: v5e:2x2
jax: 0.10.0
libtpu: 0.0.40
codegen_flags: <defaults>
</compile_context>

<pallas_src>
import math
import functools

import numpy as np
import jax
import jax.numpy as jnp
from jax.experimental import pallas as pl
from jax.experimental.pallas import tpu as pltpu


def _pair(v):
    return (v, v) if isinstance(v, int) else tuple(v)


def _round_up(x, m):
    return ((x + m - 1) // m) * m


_SUBLANE = {4: 8, 2: 16, 1: 32}


def _padded_block_bytes(shape, dtype):
    """VMEM bytes of ONE buffer of `shape`, with (sublane, lane) layout padding."""
    dt = jnp.dtype(dtype)
    sub = _SUBLANE.get(dt.itemsize, 8)
    shape = tuple(int(d) for d in shape)
    if len(shape) < 2:
        shape = (1,) * (2 - len(shape)) + shape
    lead = 1
    for d in shape[:-2]:
        lead *= d
    return (lead * _round_up(shape[-2], sub) * _round_up(shape[-1], 128)
            * dt.itemsize)


def _vmem_budget_bytes():
    """Usable scoped-VMEM budget: physical capacity minus ~20% headroom."""
    cap = 128 * 1024 * 1024
    try:  # generation-aware (64 MiB on v7x, 128 MiB on v5e/v6e)
        cap = int(getattr(pltpu.get_tpu_info(), "vmem_capacity_bytes", cap))
    except Exception:
        pass
    return (cap * 25) // 32          # ~100 MiB on 128-MiB parts, ~50 MiB on v7x


def _same_pad_amounts(H, W, KH, KW, stride, dilation):
    """TF-style SAME padding, identical arithmetic to conv2d_same_padding."""
    sh, sw = stride
    dh, dw = dilation
    out_h = (H + sh - 1) // sh
    out_w = (W + sw - 1) // sw
    pad_h = max(0, (out_h - 1) * sh + (KH - 1) * dh + 1 - H)
    pad_w = max(0, (out_w - 1) * sw + (KW - 1) * dw + 1 - W)
    # torch F.pad order is (left, right, top, bottom): odd extra pixel goes on
    # the bottom/right side.
    return pad_h // 2, pad_h - pad_h // 2, pad_w // 2, pad_w - pad_w // 2


# ---------------------------------------------------------------------------
# Kernels
# ---------------------------------------------------------------------------
def _im2col_kernel(x_ref, w_ref, b_ref, o_ref):
    """Path A: one MXU dot per (TM, TN) output tile, K = KH*KW*Cin.

    x_ref: (TM, K)   im2col patch rows (streamed per M-tile)
    w_ref: (K, TN)   packed weights tile (resident across M)
    b_ref: (1, TN)   f32 bias tile
    o_ref: (TM, TN)  output tile
    """
    acc = jnp.dot(x_ref[...], w_ref[...], preferred_element_type=jnp.float32)
    o_ref[...] = (acc + b_ref[...]).astype(o_ref.dtype)


def _tap_conv_kernel(x_ref, w_ref, b_ref, o_ref, acc_ref, *, TM, offsets):
    """Path B: stride-1 'flat im2row' — unrolled tap loop, K = Cin.

    x_ref:   (Lx, Cin)        flattened padded image (resident per batch)
    w_ref:   (KH*KW, Cin, TN) packed weights tile (resident)
    b_ref:   (1, TN)          f32 bias tile
    o_ref:   (TM, TN)         output tile
    acc_ref: (TM, TN) f32     VMEM scratch accumulator
    """
    base = pl.multiple_of(pl.program_id(2) * TM, 8)
    # Initialize the accumulator with the bias (saves the finalize add).
    acc_ref[...] = jnp.broadcast_to(b_ref[...], acc_ref.shape)
    for t, off in enumerate(offsets):          # static unroll over taps
        patch = x_ref[pl.ds(base + off, TM), :]            # contiguous window
        acc_ref[...] += jnp.dot(patch, w_ref[t],
                                preferred_element_type=jnp.float32)
    o_ref[...] = acc_ref[...].astype(o_ref.dtype)


# ---------------------------------------------------------------------------
# Wrapper
# ---------------------------------------------------------------------------
def conv2d_same_pallas(x_nchw, weight_oihw, bias=None, *, stride=(1, 1),
                       padding='SAME', dilation=(1, 1), groups=1,
                       compute_dtype=None):
    """Forward pass of Conv2d with SAME / VALID / int padding.

    x_nchw:      (N, Cin, H, W)
    weight_oihw: (Cout, Cin//groups, KH, KW)
    bias:        (Cout,) or None
    returns:     (N, Cout, Ho, Wo)
    """
    if groups != 1:
        # TODO(synk): grouped convolution not implemented in this kernel.
        raise NotImplementedError("groups != 1 not supported")

    stride, dilation = _pair(stride), _pair(dilation)
    sh, sw = stride
    dh, dw = dilation

    N, Cin, H, W = x_nchw.shape
    Cout, Cin_w, KH, KW = weight_oihw.shape
    assert Cin_w == Cin, (Cin_w, Cin)

    if padding == 'SAME':
        pt, pb, p_l, p_r = _same_pad_amounts(H, W, KH, KW, stride, dilation)
    elif padding == 'VALID':
        pt = pb = p_l = p_r = 0
    elif isinstance(padding, int):
        pt = pb = p_l = p_r = padding
    else:
        raise ValueError(
            f"Padding should be SAME, VALID or an int, not {padding!r}")

    Hp, Wp = H + pt + pb, W + p_l + p_r
    Dh, Dw = (KH - 1) * dh, (KW - 1) * dw
    if Hp <= Dh or Wp <= Dw:
        raise ValueError(
            f"Non-positive output size: input {(H, W)}, kernel {(KH, KW)}, "
            f"dilation {dilation}, padding {padding}")
    Ho = (Hp - Dh - 1) // sh + 1          # true (strided) output size
    Wo = (Wp - Dw - 1) // sw + 1

    out_dtype = x_nchw.dtype
    in_dtype = compute_dtype if compute_dtype is not None else x_nchw.dtype
    isz = jnp.dtype(in_dtype).itemsize  # noqa: F841 (kept for readability)

    # --- layout plumbing (fused by XLA under jit): NCHW -> NHWC, pad ---------
    x = jnp.transpose(x_nchw, (0, 2, 3, 1)).astype(in_dtype)       # NHWC
    x = jnp.pad(x, ((0, 0), (pt, pb), (p_l, p_r), (0, 0)))

    # Lane-dense Cout: pad to a multiple of 128 (zero weight/bias columns).
    Cout_pad = _round_up(Cout, 128)
    if Cout_pad % 256 == 0 and Cout_pad >= 512:
        TN = 256                     # match 256-wide MXU on v6e/v7x
    elif Cout_pad <= 256:
        TN = Cout_pad
    else:
        TN = 128
    n_c = Cout_pad // TN

    if bias is None:
        b2d = jnp.zeros((1, Cout_pad), jnp.float32)
    else:
        b2d = jnp.pad(bias.astype(jnp.float32).reshape(1, Cout),
                      ((0, 0), (0, Cout_pad - Cout)))

    budget = _vmem_budget_bytes()
    use_im2col = (KH * KW * Cin) <= 128      # small-Cin: fold taps into K

    if use_im2col:
        # --------------------------- Path A --------------------------------
        Kd = KH * KW * Cin
        # Wrapper-side im2col (one strided slice per tap; XLA fuses). Handles
        # stride & dilation natively -> no dense over-compute, M = Ho*Wo.
        cols = []
        for i in range(KH):
            for j in range(KW):
                cols.append(x[:, i * dh: i * dh + (Ho - 1) * sh + 1: sh,
                              j * dw: j * dw + (Wo - 1) * sw + 1: sw, :])
        xf = jnp.concatenate(cols, axis=-1).reshape(N, Ho * Wo, Kd)
        M_total = Ho * Wo

        w = jnp.transpose(weight_oihw, (2, 3, 1, 0)).reshape(Kd, Cout)
        w = w.astype(in_dtype)
        if Cout_pad != Cout:
            w = jnp.pad(w, ((0, 0), (0, Cout_pad - Cout)))

        TM = min(1024, _round_up(M_total, 8))
        if N * n_c == 1 and M_total > 8:     # keep >= 2 parallel tiles (v7x)
            TM = min(TM, _round_up((M_total + 1) // 2, 8))

        def est_a(tm):
            return (2 * _padded_block_bytes((tm, Kd), in_dtype)        # x
                    + 2 * _padded_block_bytes((Kd, TN), in_dtype)      # w
                    + 2 * _padded_block_bytes((1, TN), jnp.float32)    # bias
                    + 2 * _padded_block_bytes((tm, TN), out_dtype))    # out

        while est_a(TM) * 5 // 4 > budget and TM > 64:
            TM = max(64, _round_up(TM // 2, 8))

        n_m = pl.cdiv(M_total, TM)
        M_pad = n_m * TM
        if M_pad > M_total:
            xf = jnp.pad(xf, ((0, 0), (0, M_pad - M_total), (0, 0)))
        vmem_req = est_a(TM) * 5 // 4 + (1 << 20)

        kernel = _im2col_kernel
        in_specs = [
            pl.BlockSpec((None, TM, Kd), lambda n, c, m: (n, m, 0)),
            pl.BlockSpec((Kd, TN), lambda n, c, m: (0, c)),
            pl.BlockSpec((1, TN), lambda n, c, m: (0, c)),
        ]
        scratch_shapes = []
        dim_sem = ("parallel", "parallel", "parallel")
        x_arg = xf
    else:
        # --------------------------- Path B --------------------------------
        Ho1, Wo1 = Hp - Dh, Wp - Dw           # dense (stride-1) output size
        M_total = Ho1 * Wp
        x = x.reshape(N, Hp * Wp, Cin)        # flat rows

        w = jnp.transpose(weight_oihw, (2, 3, 1, 0)).reshape(KH * KW, Cin, Cout)
        w = w.astype(in_dtype)
        if Cout_pad != Cout:
            w = jnp.pad(w, ((0, 0), (0, 0), (0, Cout_pad - Cout)))

        TM = min(1024 if TN <= 128 else 512, _round_up(M_total, 8))
        if N * n_c == 1 and M_total > 8:      # keep >= 2 parallel tiles (v7x)
            TM = min(TM, _round_up((M_total + 1) // 2, 8))

        def est_b(tm):
            n_m_ = pl.cdiv(M_total, tm)
            lx_ = n_m_ * tm + Dh * Wp + Dw
            return (2 * _padded_block_bytes((lx_, Cin), in_dtype)          # x
                    + 2 * _padded_block_bytes((KH * KW, Cin, TN), in_dtype)
                    + 2 * _padded_block_bytes((1, TN), jnp.float32)
                    + 2 * _padded_block_bytes((tm, TN), out_dtype)
                    + _padded_block_bytes((tm, TN), jnp.float32))          # acc

        while est_b(TM) * 5 // 4 > budget and TM > 64:
            TM = max(64, _round_up(TM // 2, 8))
        # TODO(synk): if est_b still exceeds the budget (huge images), this
        #             needs halo-tiled manual DMA rather than a bigger limit.

        n_m = pl.cdiv(M_total, TM)
        M_pad = n_m * TM
        Lx = M_pad + Dh * Wp + Dw             # keeps every window in bounds
        x = jnp.pad(x, ((0, 0), (0, Lx - Hp * Wp), (0, 0)))
        vmem_req = est_b(TM) * 5 // 4 + (1 << 20)

        offsets = tuple(i * (dh * Wp) + j * dw
                        for i in range(KH) for j in range(KW))
        kernel = functools.partial(_tap_conv_kernel, TM=TM, offsets=offsets)
        in_specs = [
            # Whole flattened padded image: resident per batch element.
            pl.BlockSpec((None, Lx, Cin), lambda n, c, m: (n, 0, 0)),
            # Weights + bias: constant across m -> DMA'd once per (n, c).
            pl.BlockSpec((KH * KW, Cin, TN), lambda n, c, m: (0, 0, c)),
            pl.BlockSpec((1, TN), lambda n, c, m: (0, c)),
        ]
        scratch_shapes = [pltpu.VMEM((TM, TN), jnp.float32)]
        dim_sem = ("parallel", "parallel", "arbitrary")
        x_arg = x

    cp_kwargs = dict(dimension_semantics=dim_sem)
    # v5e's default scoped-VMEM is only 16 MiB; raise the limit whenever the
    # (padding-aware) estimate exceeds that, but never above the HW budget.
    if vmem_req > 16 * 1024 * 1024:
        cp_kwargs["vmem_limit_bytes"] = int(min(max(vmem_req, 32 * 1024 * 1024),
                                                budget))

    out_flat = pl.pallas_call(
        kernel,
        out_shape=jax.ShapeDtypeStruct((N, M_pad, Cout_pad), out_dtype),
        grid=(N, n_c, n_m),
        in_specs=in_specs,
        out_specs=pl.BlockSpec((None, TM, TN), lambda n, c, m: (n, m, c)),
        scratch_shapes=scratch_shapes,
        compiler_params=pltpu.CompilerParams(**cp_kwargs),
    )(x_arg, w, b2d)

    # --- unpack: drop Cout padding / pad rows, un-flatten, NHWC -> NCHW ------
    if use_im2col:
        out = out_flat[:, :M_total, :Cout].reshape(N, Ho, Wo, Cout)
    else:
        out = out_flat[:, :M_total, :Cout].reshape(N, Ho1, Wp, Cout)
        out = out[:, :, :Wo1, :]
        if sh > 1 or sw > 1:
            # TODO(synk): space-to-batch strided path for KH*KW*Cin > 128;
            #             currently dense compute + subsample.
            out = out[:, ::sh, ::sw, :]
    return jnp.transpose(out, (0, 3, 1, 2))


class Conv2dPallas:
    """Mirror of the PyTorch Conv2d module (SAME padding), JAX/Pallas forward."""

    def __init__(self, in_channels, out_channels, kernel_size, stride=(1, 1),
                 padding='SAME', dilation=(1, 1), groups=1, bias=True,
                 weight=None, compute_dtype=None, key=None):
        if in_channels % groups != 0 or out_channels % groups != 0:
            raise ValueError("channels must be divisible by groups")
        if groups != 1:
            raise NotImplementedError("groups != 1 not supported")
        ks = _pair(kernel_size)
        self.stride, self.padding = _pair(stride), padding
        self.dilation, self.groups = _pair(dilation), groups

        # reset_parameters: uniform(-stdv, stdv), stdv = 1/sqrt(in_ch*kh*kw)
        n = in_channels * ks[0] * ks[1]
        stdv = 1.0 / math.sqrt(n)
        key = jax.random.PRNGKey(0) if key is None else key
        kw_, kb_ = jax.random.split(key)
        if weight is None:
            self.weight = jax.random.uniform(
                kw_, (out_channels, in_channels // groups, ks[0], ks[1]),
                jnp.float32, minval=-stdv, maxval=stdv)
        else:
            self.weight = jnp.asarray(weight, jnp.float32)
        self.bias = (jax.random.uniform(kb_, (out_channels,), jnp.float32,
                                        minval=-stdv, maxval=stdv)
                     if bias else None)

        # jit the whole forward so the layout plumbing (transpose/pad/im2col
        # and the final slice/transpose) fuses around the pallas_call.
        self._forward = jax.jit(functools.partial(
            conv2d_same_pallas, stride=self.stride, padding=self.padding,
            dilation=self.dilation, groups=self.groups,
            compute_dtype=compute_dtype))

    def __call__(self, x_nchw):
        return self._forward(x_nchw, self.weight, self.bias)


if __name__ == "__main__":
    key = jax.random.PRNGKey(0)
    kx, kp, kw2, kb2, kx2 = jax.random.split(key, 5)

    def ref_conv(x, w, b, stride, dilation):
        KH, KW = w.shape[2], w.shape[3]
        ptt, pbb, pll, prr = _same_pad_amounts(x.shape[2], x.shape[3], KH, KW,
                                               _pair(stride), _pair(dilation))
        r = jax.lax.conv_general_dilated(
            x, w, window_strides=_pair(stride),
            padding=[(ptt, pbb), (pll, prr)], rhs_dilation=_pair(dilation),
            dimension_numbers=('NCHW', 'OIHW', 'NCHW'))
        return r + b[None, :, None, None]

    # --- small-Cin case: path A (full im2col, K = KH*KW*Cin <= 128) ---------
    N, Cin, H, W = 2, 4, 16, 16
    Cout, K = 8, 3
    x = jax.random.normal(kx, (N, Cin, H, W), jnp.float32)

    conv = Conv2dPallas(Cin, Cout, K, stride=(1, 1), padding='SAME',
                        dilation=(1, 1), groups=1, bias=True, key=kp)
    out = jax.block_until_ready(conv(x))
    assert out.shape == (N, Cout, H, W), out.shape
    np.testing.assert_allclose(
        np.asarray(out), np.asarray(ref_conv(x, conv.weight, conv.bias, 1, 1)),
        rtol=1e-4, atol=1e-4)

    # bf16 fast path (f32 MXU accumulation) -- loose tolerance.
    out_bf16 = jax.block_until_ready(conv2d_same_pallas(
        x, conv.weight, conv.bias, stride=(1, 1), padding='SAME',
        dilation=(1, 1), groups=1, compute_dtype=jnp.bfloat16))
    np.testing.assert_allclose(
        np.asarray(out_bf16),
        np.asarray(ref_conv(x, conv.weight, conv.bias, 1, 1)),
        rtol=6e-2, atol=6e-2)

    # Strided and dilated small-Cin cases (path A handles stride natively).
    for st, dl in (((2, 2), (1, 1)), ((1, 1), (2, 2))):
        got = jax.block_until_ready(conv2d_same_pallas(
            x, conv.weight, conv.bias, stride=st, padding='SAME',
            dilation=dl, groups=1))
        np.testing.assert_allclose(
            np.asarray(got),
            np.asarray(ref_conv(x, conv.weight, conv.bias, st, dl)),
            rtol=1e-4, atol=1e-4)

    # --- larger-Cin case: path B (per-tap shifted matmuls, taps unrolled) ----
    Cin2, Cout2 = 32, 8
    x2 = jax.random.normal(kx2, (N, Cin2, H, W), jnp.float32)
    stdv2 = 1.0 / math.sqrt(Cin2 * K * K)
    w2 = jax.random.uniform(kw2, (Cout2, Cin2, K, K), jnp.float32,
                            minval=-stdv2, maxval=stdv2)
    b2 = jax.random.uniform(kb2, (Cout2,), jnp.float32,
                            minval=-stdv2, maxval=stdv2)
    for st, dl in (((1, 1), (1, 1)), ((2, 2), (1, 1)), ((1, 1), (2, 2))):
        got = jax.block_until_ready(conv2d_same_pallas(
            x2, w2, b2, stride=st, padding='SAME', dilation=dl, groups=1))
        np.testing.assert_allclose(
            np.asarray(got), np.asarray(ref_conv(x2, w2, b2, st, dl)),
            rtol=1e-4, atol=1e-4)

    print("KERNEL_OK")
</pallas_src>

<mosaic_0001>
module attributes {stable_mosaic.version = 11 : i64} {
  func.func @_im2col_kernel(%arg0: i32, %arg1: i32, %arg2: i32, %arg3: memref<1x256x36xf32, #tpu.memory_space<vmem>>, %arg4: memref<36x128xf32, #tpu.memory_space<vmem>>, %arg5: memref<1x128xf32, #tpu.memory_space<vmem>>, %arg6: memref<1x256x128xf32, #tpu.memory_space<vmem>>) attributes {dimension_semantics = [#tpu.dimension_semantics<parallel>, #tpu.dimension_semantics<parallel>, #tpu.dimension_semantics<parallel>], iteration_bounds = array<i64: 2, 1, 1>, scalar_prefetch = 0 : i64, scratch_operands = 0 : i64, tpu.core_type = #tpu.core_type<tc>, window_params = [{transform_indices = @transform_0, window_bounds = array<i64: 1, 256, 36>}, {transform_indices = @transform_1, window_bounds = array<i64: 36, 128>}, {transform_indices = @transform_2, window_bounds = array<i64: 1, 128>}, {transform_indices = @transform_3, window_bounds = array<i64: 1, 256, 128>}]} {
    %c0 = arith.constant 0 : index
    %c0_0 = arith.constant 0 : index
    %c0_1 = arith.constant 0 : index
    %0 = vector.load %arg3[%c0, %c0_0, %c0_1] : memref<1x256x36xf32, #tpu.memory_space<vmem>>, vector<1x256x36xf32>
    %1 = vector.shape_cast %0 : vector<1x256x36xf32> to vector<256x36xf32>
    %c0_2 = arith.constant 0 : index
    %c0_3 = arith.constant 0 : index
    %2 = vector.load %arg4[%c0_2, %c0_3] : memref<36x128xf32, #tpu.memory_space<vmem>>, vector<36x128xf32>
    %cst = arith.constant dense<0.000000e+00> : vector<256x128xf32>
    %3 = tpu.matmul %1, %2, %cst {dimension_numbers = #tpu.dot_dimension_numbers<[1], [0], [0], [1], [0, 0, 1, 1], [], []>} : vector<256x36xf32>, vector<36x128xf32>, vector<256x128xf32> -> vector<256x128xf32>
    %c0_4 = arith.constant 0 : index
    %c0_5 = arith.constant 0 : index
    %4 = vector.load %arg5[%c0_4, %c0_5] : memref<1x128xf32, #tpu.memory_space<vmem>>, vector<1x128xf32>
    %5 = vector.broadcast %4 : vector<1x128xf32> to vector<256x128xf32>
    %6 = arith.addf %3, %5 : vector<256x128xf32>
    %c0_6 = arith.constant 0 : index
    %c0_7 = arith.constant 0 : index
    %c0_8 = arith.constant 0 : index
    %7 = vector.load %arg6[%c0_6, %c0_7, %c0_8] : memref<1x256x128xf32, #tpu.memory_space<vmem>>, vector<1x256x128xf32>
    %8 = vector.shape_cast %7 : vector<1x256x128xf32> to vector<256x128xf32>
    %9 = vector.shape_cast %6 : vector<256x128xf32> to vector<1x256x128xf32>
    tpu.vector_store %arg6[%c0_6, %c0_7, %c0_8], %9 {strides = array<i32>} : memref<1x256x128xf32, #tpu.memory_space<vmem>>, vector<1x256x128xf32>,
    return
  }
  func.func @transform_0(%arg0: i32, %arg1: i32, %arg2: i32) -> (i32, i32, i32) {
    %c0_i32 = arith.constant 0 : i32
    %c0_i32_0 = arith.constant 0 : i32
    return %arg0, %arg2, %c0_i32 : i32, i32, i32
  }
  func.func @transform_1(%arg0: i32, %arg1: i32, %arg2: i32) -> (i32, i32) {
    %c0_i32 = arith.constant 0 : i32
    %c0_i32_0 = arith.constant 0 : i32
    return %c0_i32, %arg1 : i32, i32
  }
  func.func @transform_2(%arg0: i32, %arg1: i32, %arg2: i32) -> (i32, i32) {
    %c0_i32 = arith.constant 0 : i32
    %c0_i32_0 = arith.constant 0 : i32
    return %c0_i32, %arg1 : i32, i32
  }
  func.func @transform_3(%arg0: i32, %arg1: i32, %arg2: i32) -> (i32, i32, i32) {
    %c0_i32 = arith.constant 0 : i32
    return %arg0, %arg2, %arg1 : i32, i32, i32
  }
}

</mosaic_0001>

<bundles_post_ra>
// kernel: conv2d_same_pallas.1
= control target key start
LH: loop header
LB: loop body
LE: loop exit
PB: predicated region body
PF: predicated region fallthrough
CT: control target
= control target key end

     0   :  { %s802_s12 = smov 0   ;;  %s804_s13 = smov 0   ;;  %s994_s0 = inlined_call_operand.vmem [shape: f32[2,256,36], index: 0, kind: input, shape index: {}]   ;;  %s995_s1 = inlined_call_operand.vmem [shape: f32[36,128], index: 1, kind: input, shape index: {}]   ;;  %s996_s2 = inlined_call_operand.vmem [shape: f32[1,128], index: 2, kind: input, shape index: {}]   ;;  %s997_s3 = inlined_call_operand.vmem [shape: f32[2,256,128], index: 3, kind: output, shape index: {}]  }
   0x1   :  { %s806_s14 = smov 0  }
   0x2 LB: > { %s32_s15 = sadd.s32 1, %s776_s13  ;;  %p676_p0 = scmp.ge.s32.totalorder %s780_s14, 1  ;;  %s780_s14 = sphi %s806_s14, %s13_s14   ;;  %s776_s13 = sphi %s804_s13, %s999_s13   ;;  %s772_s12 = sphi %s802_s12, %s998_s12  }
   0x3   : > { %p34_p1 = scmp.ge.s32.totalorder %s32_s15, 2  ;;  %p184_p2 = scmp.lt.s32.totalorder %s780_s14, 3 }
   0x5   : > { %s1001_s15 = smov (%p34_p1, %s32_s15), 0  ;;  %p185_p3 = pnand %p676_p0, %p184_p2 }
   0x6   : > { %p227_p4 = scmp.lt.s32.totalorder (!%p185_p3), %s772_s12, 1 }
   0x7   : > { %188 = sbr.rel (%p185_p3) target bundleno = 214 (0xd6), region = 32 }
   0xc   : > { %v292_v0 = vld [vmem:[%s995_s1 + $0x20] sm:$0xf]  ;;  %vm394_vm0 = vcmask 1043456   ;;  %v291_v1 = vld [vmem:[%s995_s1 + $0x18] sm:$0xff]  ;;  %v290_v2 = vld [vmem:[%s995_s1 + $0x10] sm:$0xff]  ;;  %s1003_s12 = smov (!%p227_p4, %s772_s12), 1 }
   0xd   : > { %719 = vmatpush.msk.msra.mxu2 %vm394_vm0, %v292_v0  ;;  %720 = vmatpush.msk.msra.mxu3 %vm394_vm0, %v292_v0  ;;  %v289_v3 = vld [vmem:[%s995_s1 + $0x8] sm:$0xff]  ;;  %s716_s24 = sshll.u32 %s1003_s12, 8  ;;  %v288_v4 = vld [vmem:[%s995_s1] sm:$0xff]  ;;  %vm297_vm1 = vcmask 293888  }
   0xe   : > { %681 = vmatpush.msk.msra.mxu0 %vm394_vm0, %v292_v0  ;;  %718 = vmatpush.msk.msra.mxu1 %vm394_vm0, %v292_v0  ;;  %s840_s27 = scalar_lea.vmem %s994_s0, %s716_s24  ;;  %v912_v37 = vld [vmem:[%s996_s2] ss:$0 sm:$0xff]  ;;  %s919_s7 = scalar_lea.vmem %s997_s3, %s716_s24 }
   0xf   : > { %722 = vmatpush.msra.mxu2 %v291_v1  ;;  %723 = vmatpush.msra.mxu3 %v291_v1  ;;  %v272_v5 = vld [vmem:[%s840_s27 + $0x80] sm:$0xff]  ;;  %v273_v9 = vld [vmem:[%s840_s27 + $0x88] sm:$0xff]  ;;  %v274_v13 = vld [vmem:[%s840_s27 + $0x90] sm:$0xff] }
  0x10   : > { %410 = vmatpush.msra.mxu0 %v291_v1  ;;  %721 = vmatpush.msra.mxu1 %v291_v1  ;;  %v280_v6 = vld [vmem:[%s840_s27 + $0xc0] sm:$0xff]  ;;  %v281_v10 = vld [vmem:[%s840_s27 + $0xc8] sm:$0xff]  ;;  %v282_v14 = vld [vmem:[%s840_s27 + $0xd0] sm:$0xff] }
  0x11   : > { %725 = vmatpush.msra.mxu2 %v290_v2  ;;  %726 = vmatpush.msra.mxu3 %v290_v2  ;;  %v256_v7 = vld [vmem:[%s840_s27] sm:$0xff]  ;;  %v257_v11 = vld [vmem:[%s840_s27 + $0x8] sm:$0xff]  ;;  %v258_v15 = vld [vmem:[%s840_s27 + $0x10] sm:$0xff] }
  0x12   : > { %411 = vmatpush.msra.mxu0 %v290_v2  ;;  %724 = vmatpush.msra.mxu1 %v290_v2  ;;  %v264_v8 = vld [vmem:[%s840_s27 + $0x40] sm:$0xff]  ;;  %v265_v12 = vld [vmem:[%s840_s27 + $0x48] sm:$0xff]  ;;  %v266_v16 = vld [vmem:[%s840_s27 + $0x50] sm:$0xff] }
  0x13   : > { %728 = vmatpush.msra.mxu2 %v289_v3  ;;  %729 = vmatpush.msra.mxu3 %v289_v3  ;;  %v275_v17 = vld [vmem:[%s840_s27 + $0x98] sm:$0xff]  ;;  %v276_v21 = vld [vmem:[%s840_s27 + $0xa0] sm:$0xff]  ;;  %v277_v25 = vld [vmem:[%s840_s27 + $0xa8] sm:$0xff] }
  0x14   : > { %412 = vmatpush.msra.mxu0 %v289_v3  ;;  %727 = vmatpush.msra.mxu1 %v289_v3  ;;  %v283_v18 = vld [vmem:[%s840_s27 + $0xd8] sm:$0xff]  ;;  %v284_v22 = vld [vmem:[%s840_s27 + $0xe0] sm:$0xff]  ;;  %v285_v26 = vld [vmem:[%s840_s27 + $0xe8] sm:$0xff] }
  0x15   : > { %731 = vmatpush.msra.mxu2 %v288_v4  ;;  %732 = vmatpush.msra.mxu3 %v288_v4  ;;  %v259_v19 = vld [vmem:[%s840_s27 + $0x18] sm:$0xff]  ;;  %v260_v23 = vld [vmem:[%s840_s27 + $0x20] sm:$0xff]  ;;  %v261_v27 = vld [vmem:[%s840_s27 + $0x28] sm:$0xff] }
  0x16   : > { %698 = vmatmul.msk.f32.vlgmr.msra.gmra.mxu2 %vm297_vm1, %v272_v5  ;;  %706 = vmatmul.msk.f32.vlgmr.msra.gmra.mxu3 %vm297_vm1, %v280_v6  ;;  %v267_v20 = vld [vmem:[%s840_s27 + $0x58] sm:$0xff]  ;;  %v268_v24 = vld [vmem:[%s840_s27 + $0x60] sm:$0xff]  ;;  %v269_v28 = vld [vmem:[%s840_s27 + $0x68] sm:$0xff] }
  0x17   : > { %413 = vmatpush.msra.mxu0 %v288_v4  ;;  %730 = vmatpush.msra.mxu1 %v288_v4  ;;  %v278_v29 = vld [vmem:[%s840_s27 + $0xb0] sm:$0xff]  ;;  %v279_v33 = vld [vmem:[%s840_s27 + $0xb8] sm:$0xff] }
  0x18   : > { %682 = vmatmul.msk.f32.vlgmr.msra.gmra.mxu0 %vm297_vm1, %v256_v7  ;;  %690 = vmatmul.msk.f32.vlgmr.msra.gmra.mxu1 %vm297_vm1, %v264_v8  ;;  %v286_v30 = vld [vmem:[%s840_s27 + $0xf0] sm:$0xff]  ;;  %v287_v34 = vld [vmem:[%s840_s27 + $0xf8] sm:$0xff] }
  0x19   : > { %v262_v31 = vld [vmem:[%s840_s27 + $0x30] sm:$0xff]  ;;  %v263_v35 = vld [vmem:[%s840_s27 + $0x38] sm:$0xff] }
  0x1a   : > { %v270_v32 = vld [vmem:[%s840_s27 + $0x70] sm:$0xff]  ;;  %v271_v36 = vld [vmem:[%s840_s27 + $0x78] sm:$0xff] }
  0x1e   : > { %699 = vmatmul.msk.f32.gmra.mxu2 %vm297_vm1, %v273_v9  ;;  %707 = vmatmul.msk.f32.gmra.mxu3 %vm297_vm1, %v281_v10 }
  0x20   : > { %683 = vmatmul.msk.f32.gmra.mxu0 %vm297_vm1, %v257_v11  ;;  %691 = vmatmul.msk.f32.gmra.mxu1 %vm297_vm1, %v265_v12 }
  0x26   : > { %700 = vmatmul.msk.f32.gmra.mxu2 %vm297_vm1, %v274_v13  ;;  %708 = vmatmul.msk.f32.gmra.mxu3 %vm297_vm1, %v282_v14 }
  0x28   : > { %684 = vmatmul.msk.f32.gmra.mxu0 %vm297_vm1, %v258_v15  ;;  %692 = vmatmul.msk.f32.gmra.mxu1 %vm297_vm1, %v266_v16 }
  0x2e   : > { %701 = vmatmul.msk.f32.gmra.mxu2 %vm297_vm1, %v275_v17  ;;  %709 = vmatmul.msk.f32.gmra.mxu3 %vm297_vm1, %v283_v18 }
  0x30   : > { %685 = vmatmul.msk.f32.gmra.mxu0 %vm297_vm1, %v259_v19  ;;  %693 = vmatmul.msk.f32.gmra.mxu1 %vm297_vm1, %v267_v20 }
  0x36   : > { %702 = vmatmul.msk.f32.gmra.mxu2 %vm297_vm1, %v276_v21  ;;  %710 = vmatmul.msk.f32.gmra.mxu3 %vm297_vm1, %v284_v22 }
  0x38   : > { %686 = vmatmul.msk.f32.gmra.mxu0 %vm297_vm1, %v260_v23  ;;  %694 = vmatmul.msk.f32.gmra.mxu1 %vm297_vm1, %v268_v24 }
  0x3e   : > { %703 = vmatmul.msk.f32.gmra.mxu2 %vm297_vm1, %v277_v25  ;;  %711 = vmatmul.msk.f32.gmra.mxu3 %vm297_vm1, %v285_v26 }
  0x40   : > { %687 = vmatmul.msk.f32.gmra.mxu0 %vm297_vm1, %v261_v27  ;;  %695 = vmatmul.msk.f32.gmra.mxu1 %vm297_vm1, %v269_v28 }
  0x46   : > { %704 = vmatmul.msk.f32.gmra.mxu2 %vm297_vm1, %v278_v29  ;;  %712 = vmatmul.msk.f32.gmra.mxu3 %vm297_vm1, %v286_v30 }
  0x48   : > { %688 = vmatmul.msk.f32.gmra.mxu0 %vm297_vm1, %v262_v31  ;;  %696 = vmatmul.msk.f32.gmra.mxu1 %vm297_vm1, %v270_v32 }
  0x4e   : > { %705 = vmatmul.msk.f32.gmra.mxu2 %vm297_vm1, %v279_v33  ;;  %713 = vmatmul.msk.f32.gmra.mxu3 %vm297_vm1, %v287_v34 }
  0x50   : > { %689 = vmatmul.msk.f32.gmra.mxu0 %vm297_vm1, %v263_v35  ;;  %697 = vmatmul.msk.f32.gmra.mxu1 %vm297_vm1, %v271_v36 }
  0x95   : > { %v415_v38 = vpop.f32.mrf.mxu0  ;;  %v439_v39 = vpop.f32.mrf.mxu1 }
  0x96   : > { %v416_v40 = vadd.f32 %v912_v37, %v415_v38  ;;  %v440_v41 = vadd.f32 %v912_v37, %v439_v39 }
  0x98   : > { %511 = vst [vmem:[%s919_s7] sm:$0xff] %v416_v40 }
  0x99   : > { %519 = vst [vmem:[%s919_s7 + $0x40] sm:$0xff] %v440_v41  ;;  %v463_v42 = vpop.f32.mrf.mxu2  ;;  %v487_v43 = vpop.f32.mrf.mxu3 }
  0x9a   : > { %v464_v44 = vadd.f32 %v912_v37, %v463_v42  ;;  %v488_v45 = vadd.f32 %v912_v37, %v487_v43 }
  0x9c   : > { %527 = vst [vmem:[%s919_s7 + $0x80] sm:$0xff] %v464_v44 }
  0x9d   : > { %535 = vst [vmem:[%s919_s7 + $0xc0] sm:$0xff] %v488_v45  ;;  %v418_v46 = vpop.f32.mrf.mxu0  ;;  %v442_v47 = vpop.f32.mrf.mxu1 }
  0x9e   : > { %v419_v48 = vadd.f32 %v912_v37, %v418_v46  ;;  %v443_v49 = vadd.f32 %v912_v37, %v442_v47 }
  0xa0   : > { %512 = vst [vmem:[%s919_s7 + $0x8] sm:$0xff] %v419_v48 }
  0xa1   : > { %520 = vst [vmem:[%s919_s7 + $0x48] sm:$0xff] %v443_v49  ;;  %v466_v50 = vpop.f32.mrf.mxu2  ;;  %v490_v51 = vpop.f32.mrf.mxu3 }
  0xa2   : > { %v467_v52 = vadd.f32 %v912_v37, %v466_v50  ;;  %v491_v53 = vadd.f32 %v912_v37, %v490_v51 }
  0xa4   : > { %528 = vst [vmem:[%s919_s7 + $0x88] sm:$0xff] %v467_v52 }
  0xa5   : > { %536 = vst [vmem:[%s919_s7 + $0xc8] sm:$0xff] %v491_v53  ;;  %v421_v54 = vpop.f32.mrf.mxu0  ;;  %v445_v55 = vpop.f32.mrf.mxu1 }
  0xa6   : > { %v422_v56 = vadd.f32 %v912_v37, %v421_v54  ;;  %v446_v57 = vadd.f32 %v912_v37, %v445_v55 }
  0xa8   : > { %513 = vst [vmem:[%s919_s7 + $0x10] sm:$0xff] %v422_v56 }
  0xa9   : > { %521 = vst [vmem:[%s919_s7 + $0x50] sm:$0xff] %v446_v57  ;;  %v469_v58 = vpop.f32.mrf.mxu2  ;;  %v493_v59 = vpop.f32.mrf.mxu3 }
  0xaa   : > { %v470_v60 = vadd.f32 %v912_v37, %v469_v58  ;;  %v494_v61 = vadd.f32 %v912_v37, %v493_v59 }
  0xac   : > { %529 = vst [vmem:[%s919_s7 + $0x90] sm:$0xff] %v470_v60 }
  0xad   : > { %537 = vst [vmem:[%s919_s7 + $0xd0] sm:$0xff] %v494_v61  ;;  %v424_v62 = vpop.f32.mrf.mxu0  ;;  %v448_v63 = vpop.f32.mrf.mxu1 }
  0xae   : > { %v425_v0 = vadd.f32 %v912_v37, %v424_v62  ;;  %v449_v1 = vadd.f32 %v912_v37, %v448_v63 }
  0xb0   : > { %514 = vst [vmem:[%s919_s7 + $0x18] sm:$0xff] %v425_v0 }
  0xb1   : > { %522 = vst [vmem:[%s919_s7 + $0x58] sm:$0xff] %v449_v1  ;;  %v472_v2 = vpop.f32.mrf.mxu2  ;;  %v496_v3 = vpop.f32.mrf.mxu3 }
  0xb2   : > { %v473_v4 = vadd.f32 %v912_v37, %v472_v2  ;;  %v497_v5 = vadd.f32 %v912_v37, %v496_v3 }
  0xb4   : > { %530 = vst [vmem:[%s919_s7 + $0x98] sm:$0xff] %v473_v4 }
  0xb5   : > { %538 = vst [vmem:[%s919_s7 + $0xd8] sm:$0xff] %v497_v5  ;;  %v427_v6 = vpop.f32.mrf.mxu0  ;;  %v451_v7 = vpop.f32.mrf.mxu1 }
  0xb6   : > { %v428_v8 = vadd.f32 %v912_v37, %v427_v6  ;;  %v452_v9 = vadd.f32 %v912_v37, %v451_v7 }
  0xb8   : > { %515 = vst [vmem:[%s919_s7 + $0x20] sm:$0xff] %v428_v8 }
  0xb9   : > { %523 = vst [vmem:[%s919_s7 + $0x60] sm:$0xff] %v452_v9  ;;  %v475_v10 = vpop.f32.mrf.mxu2  ;;  %v499_v11 = vpop.f32.mrf.mxu3 }
  0xba   : > { %v476_v12 = vadd.f32 %v912_v37, %v475_v10  ;;  %v500_v13 = vadd.f32 %v912_v37, %v499_v11 }
  0xbc   : > { %531 = vst [vmem:[%s919_s7 + $0xa0] sm:$0xff] %v476_v12 }
  0xbd   : > { %539 = vst [vmem:[%s919_s7 + $0xe0] sm:$0xff] %v500_v13  ;;  %v430_v14 = vpop.f32.mrf.mxu0  ;;  %v454_v15 = vpop.f32.mrf.mxu1 }
  0xbe   : > { %v431_v16 = vadd.f32 %v912_v37, %v430_v14  ;;  %v455_v17 = vadd.f32 %v912_v37, %v454_v15 }
  0xc0   : > { %516 = vst [vmem:[%s919_s7 + $0x28] sm:$0xff] %v431_v16 }
  0xc1   : > { %524 = vst [vmem:[%s919_s7 + $0x68] sm:$0xff] %v455_v17  ;;  %v478_v18 = vpop.f32.mrf.mxu2  ;;  %v502_v19 = vpop.f32.mrf.mxu3 }
  0xc2   : > { %v479_v20 = vadd.f32 %v912_v37, %v478_v18  ;;  %v503_v21 = vadd.f32 %v912_v37, %v502_v19 }
  0xc4   : > { %532 = vst [vmem:[%s919_s7 + $0xa8] sm:$0xff] %v479_v20 }
  0xc5   : > { %540 = vst [vmem:[%s919_s7 + $0xe8] sm:$0xff] %v503_v21  ;;  %v433_v22 = vpop.f32.mrf.mxu0  ;;  %v457_v23 = vpop.f32.mrf.mxu1 }
  0xc6   : > { %v434_v24 = vadd.f32 %v912_v37, %v433_v22  ;;  %v458_v25 = vadd.f32 %v912_v37, %v457_v23 }
  0xc8   : > { %517 = vst [vmem:[%s919_s7 + $0x30] sm:$0xff] %v434_v24 }
  0xc9   : > { %525 = vst [vmem:[%s919_s7 + $0x70] sm:$0xff] %v458_v25  ;;  %v481_v26 = vpop.f32.mrf.mxu2  ;;  %v505_v27 = vpop.f32.mrf.mxu3 }
  0xca   : > { %v482_v28 = vadd.f32 %v912_v37, %v481_v26  ;;  %v506_v29 = vadd.f32 %v912_v37, %v505_v27 }
  0xcc   : > { %533 = vst [vmem:[%s919_s7 + $0xb0] sm:$0xff] %v482_v28 }
  0xcd   : > { %541 = vst [vmem:[%s919_s7 + $0xf0] sm:$0xff] %v506_v29  ;;  %v436_v30 = vpop.f32.mrf.mxu0  ;;  %v460_v31 = vpop.f32.mrf.mxu1 }
  0xce   : > { %v437_v32 = vadd.f32 %v912_v37, %v436_v30  ;;  %v461_v33 = vadd.f32 %v912_v37, %v460_v31 }
  0xd0   : > { %518 = vst [vmem:[%s919_s7 + $0x38] sm:$0xff] %v437_v32 }
  0xd1   : > { %526 = vst [vmem:[%s919_s7 + $0x78] sm:$0xff] %v461_v33  ;;  %v484_v34 = vpop.f32.mrf.mxu2  ;;  %v508_v35 = vpop.f32.mrf.mxu3 }
  0xd2   : > { %v485_v36 = vadd.f32 %v912_v37, %v484_v34  ;;  %v509_v38 = vadd.f32 %v912_v37, %v508_v35 }
  0xd4   : > { %534 = vst [vmem:[%s919_s7 + $0xb8] sm:$0xff] %v485_v36 }
  0xd5   : > { %542 = vst [vmem:[%s919_s7 + $0xf8] sm:$0xff] %v509_v38 }
  0xd6 PF: > { %s13_s14 = sadd.s32 1, %s780_s14   ;;  %s998_s12 = smov %s776_s13 }
  0xd7   : > { %p10_p5 = scmp.ge.s32.totalorder %s13_s14, 4   ;;  %s999_s13 = smov %s1001_s15 }
  0xd9   :  { %12 = sbr.rel (!%p10_p5) target bundleno = 2 (0x2), region = 68 }

</bundles_post_ra>
